<compile_context>
chip_gen: v6e
topology: v6e:2x2x1
jax: 0.10.0
libtpu: 0.0.40
codegen_flags: <defaults>
</compile_context>

<pallas_src>
import jax
import jax.numpy as jnp
from jax.experimental import pallas as pl
from jax.experimental.pallas import tpu as pltpu


def _round_up(x, m):
    return ((x + m - 1) // m) * m


def bahdanau_kernel(qin_ref, wqT_ref, bq_ref, keysf_ref, wred_ref, enc_ref,
                    alphas_ref, ctx_ref):
    """Processes one block of TB decode steps.

    qin   : (TB, Q)    flattened query inputs, one row per decode step
    wqT   : (Q, H)     query_layer weight, pre-transposed (qin @ wqT on MXU)
    bq    : (1, H)     query_layer bias
    keysf : (1, S*H)   keys flattened row-major: column s*H + h = keys[s, h]
    wred  : (S*H, S)   block-diagonal energy weights: wred[s*H + h, s] = we[h]
    enc   : (S, E)     encoder outputs
    outs  : alphas (TB, S), ctx (TB, E)
    """
    f32 = jnp.float32
    hp = jax.lax.Precision.HIGHEST
    S = enc_ref.shape[0]

    # ---- query projection on the MXU: (TB, Q) @ (Q, H) -> (TB, H) ----
    query = jnp.dot(qin_ref[...], wqT_ref[...],
                    preferred_element_type=f32, precision=hp) + bq_ref[...]

    # ---- energies for all S positions at once, 2-D and lane-dense ----
    # Repeat query along lanes (column s*H+h holds query[:, h]), add flattened
    # keys with a row broadcast, tanh on the EUP, then reduce every H-chunk
    # with the block-diagonal `we` matrix on the MXU.
    q_big = jnp.concatenate([query] * S, axis=-1)               # (TB, S*H)
    t = jnp.tanh(q_big + keysf_ref[...])                        # (TB, S*H)
    e = jnp.dot(t, wred_ref[...],
                preferred_element_type=f32, precision=hp)       # (TB, S)
    # NOTE: energy bias `be` intentionally omitted — exact no-op under softmax.

    # ---- numerically stable softmax over the sequence axis (exact divide) ----
    m = jnp.max(e, axis=-1, keepdims=True)
    p = jnp.exp(e - m)
    alphas = p / jnp.sum(p, axis=-1, keepdims=True)
    alphas_ref[...] = alphas                                    # (TB, S)

    # ---- context on the MXU: (TB, S) @ (S, E) -> (TB, E) ----
    ctx_ref[...] = jnp.dot(alphas, enc_ref[...],
                           preferred_element_type=f32, precision=hp)


def _bahdanau_call(qin_batch, keys, encoder_outputs, params, *, block_t=128):
    """Run T independent decode steps in ONE pallas_call.

    qin_batch: (T, Q) flattened query inputs (one row per step).
    keys: (S, H) pre-projected keys, encoder_outputs: (S, E).
    Returns (alphas (T, S), context (T, E)), both float32.
    """
    f32 = jnp.float32
    wq, bq, we = params["wq"], params["bq"], params["we"]
    T, Q = qin_batch.shape
    S, H = keys.shape
    E = encoder_outputs.shape[-1]

    # Block TB decode steps per grid iteration (multiple of 8 sublanes).
    TB = _round_up(max(8, min(block_t, _round_up(T, 8))), 8)
    grid_t = pl.cdiv(T, TB)
    T_pad = grid_t * TB

    qin = jnp.pad(qin_batch.astype(f32), ((0, T_pad - T), (0, 0)))

    # Host-side layout prep (once per call, negligible vs. kernel):
    wqT = jnp.asarray(wq, f32).T                       # (Q, H)
    bq_row = jnp.asarray(bq, f32).reshape(1, H)        # (1, H)
    keysf = jnp.asarray(keys, f32).reshape(1, S * H)   # (1, S*H)
    wred = jnp.kron(jnp.eye(S, dtype=f32),
                    jnp.asarray(we, f32).reshape(H, 1))  # (S*H, S) block-diag
    enc_f = jnp.asarray(encoder_outputs, f32)          # (S, E)

    # TODO(synk): for large S, tile the sequence axis with a second
    # ("arbitrary") grid dim + online softmax instead of keeping keys/enc
    # fully VMEM-resident; optionally store keys/enc in bf16 on v6e/v7x and
    # single-buffer the invariant operands (v7x has only 64 MiB VMEM).
    alphas_all, ctx_all = pl.pallas_call(
        bahdanau_kernel,
        grid=(grid_t,),
        in_specs=[
            pl.BlockSpec((TB, Q), lambda t: (t, 0)),       # per-block queries
            pl.BlockSpec((Q, H), lambda t: (0, 0)),        # wq^T   (resident)
            pl.BlockSpec((1, H), lambda t: (0, 0)),        # bq     (resident)
            pl.BlockSpec((1, S * H), lambda t: (0, 0)),    # keys   (resident)
            pl.BlockSpec((S * H, S), lambda t: (0, 0)),    # we blk (resident)
            pl.BlockSpec((S, E), lambda t: (0, 0)),        # enc    (resident)
        ],
        out_specs=(
            pl.BlockSpec((TB, S), lambda t: (t, 0)),       # alphas block
            pl.BlockSpec((TB, E), lambda t: (t, 0)),       # context block
        ),
        out_shape=(
            jax.ShapeDtypeStruct((T_pad, S), f32),
            jax.ShapeDtypeStruct((T_pad, E), f32),
        ),
        compiler_params=pltpu.CompilerParams(
            dimension_semantics=("parallel",)),
    )(qin, wqT, bq_row, keysf, wred, enc_f)
    return alphas_all[:T], ctx_all[:T]


def bahdanau_forward(hidden, keys, encoder_outputs, params):
    """Module-equivalent single-step forward. `hidden` is a tuple of arrays.
    Returns (context (1,1,E), alphas (1,1,S)) exactly like the PyTorch module.
    NOTE: decode loops should prefer bahdanau_forward_batched (one launch for
    many steps) — at T=1 the call is dominated by launch/pipeline overhead."""
    query_input = jnp.concatenate([h.reshape(-1) for h in hidden], axis=-1)
    qin = query_input.reshape(1, -1)                   # (1, Q)
    alphas, ctx = _bahdanau_call(qin, keys, encoder_outputs, params)
    S = keys.shape[0]
    E = encoder_outputs.shape[-1]
    return ctx.reshape(1, 1, E), alphas.reshape(1, 1, S)


def bahdanau_forward_batched(query_inputs, keys, encoder_outputs, params,
                             *, block_t=128):
    """Amortized decode: query_inputs (T, Q) — T steps, one kernel launch.
    Returns (context (T,1,E), alphas (T,1,S)); each step matches forward()."""
    alphas, ctx = _bahdanau_call(query_inputs, keys, encoder_outputs, params,
                                 block_t=block_t)
    T = query_inputs.shape[0]
    return ctx.reshape(T, 1, -1), alphas.reshape(T, 1, -1)


def init_params(key, key_size, query_size, hidden_size):
    """Deterministic Linear-style init (uniform +-1/sqrt(fan_in))."""
    ks = jax.random.split(key, 6)

    def lin(kw, kb, fan_in, fan_out):
        bound = 1.0 / jnp.sqrt(fan_in)
        w = jax.random.uniform(kw, (fan_out, fan_in), jnp.float32, -bound, bound)
        b = jax.random.uniform(kb, (fan_out,), jnp.float32, -bound, bound)
        return w, b

    # proj_layer is unused in forward(); created for module parity only.
    wp, bp = lin(ks[0], ks[1], key_size, hidden_size)
    wq, bq = lin(ks[2], ks[3], query_size, hidden_size)
    we, be = lin(ks[4], ks[5], hidden_size, 1)
    return {"wp": wp, "bp": bp, "wq": wq, "bq": bq, "we": we, "be": be}


def _reference(q_in, keys, enc, params):
    """Pure-JAX reference of the PyTorch forward (true-f32 precision)."""
    hp = jax.lax.Precision.HIGHEST
    q = jnp.dot(q_in, params["wq"].T, precision=hp) + params["bq"]
    e = jnp.dot(jnp.tanh(q + keys), params["we"].T, precision=hp) + params["be"]
    a = jax.nn.softmax(e, axis=0)                      # (S, 1)
    ctx = jnp.dot(a.T, enc, precision=hp).reshape(1, 1, -1)
    return ctx, a.T.reshape(1, 1, -1)


if __name__ == "__main__":
    key_size, query_size, hidden_size = 32, 32, 32
    seq_len, enc_dim = 8, key_size

    root = jax.random.PRNGKey(0)
    k_par, k_h0, k_h1, k_keys, k_enc, k_batch = jax.random.split(root, 6)

    params = init_params(k_par, key_size, query_size, hidden_size)

    # hidden: tuple of two (1, 16) tensors -> concat/flatten to query_size=32
    hidden = (jax.random.normal(k_h0, (1, query_size // 2), jnp.float32),
              jax.random.normal(k_h1, (1, query_size // 2), jnp.float32))
    keys = jax.random.normal(k_keys, (seq_len, hidden_size), jnp.float32)
    encoder_outputs = jax.random.normal(k_enc, (seq_len, enc_dim), jnp.float32)

    # ---- single-step forward (module semantics) ----
    context, alphas = bahdanau_forward(hidden, keys, encoder_outputs, params)
    jax.block_until_ready((context, alphas))

    q_in = jnp.concatenate([h.reshape(-1) for h in hidden], -1)
    ctx_ref, a_ref = _reference(q_in, keys, encoder_outputs, params)
    assert context.shape == (1, 1, enc_dim) and alphas.shape == (1, 1, seq_len)
    assert jnp.allclose(alphas, a_ref, atol=1e-4, rtol=1e-4), (
        "alphas max err %e" % float(jnp.max(jnp.abs(alphas - a_ref))))
    assert jnp.allclose(context, ctx_ref, atol=1e-4, rtol=1e-4), (
        "context max err %e" % float(jnp.max(jnp.abs(context - ctx_ref))))

    # ---- batched decode: one pallas_call, grid > 1, padded step count ----
    T = 20
    q_batch = jax.random.normal(k_batch, (T, query_size), jnp.float32)
    ctx_b, alphas_b = bahdanau_forward_batched(q_batch, keys, encoder_outputs,
                                               params, block_t=8)
    jax.block_until_ready((ctx_b, alphas_b))
    for t in range(T):
        ctx_r, a_r = _reference(q_batch[t], keys, encoder_outputs, params)
        assert jnp.allclose(alphas_b[t].reshape(1, 1, -1), a_r,
                            atol=1e-4, rtol=1e-4), f"alphas mismatch step {t}"
        assert jnp.allclose(ctx_b[t].reshape(1, 1, -1), ctx_r,
                            atol=1e-4, rtol=1e-4), f"context mismatch step {t}"

    print("KERNEL_OK")
</pallas_src>

<mosaic_0001>
module attributes {stable_mosaic.version = 11 : i64} {
  func.func @bahdanau_kernel(%arg0: i32, %arg1: memref<8x32xf32, #tpu.memory_space<vmem>>, %arg2: memref<32x32xf32, #tpu.memory_space<vmem>>, %arg3: memref<1x32xf32, #tpu.memory_space<vmem>>, %arg4: memref<1x256xf32, #tpu.memory_space<vmem>>, %arg5: memref<256x8xf32, #tpu.memory_space<vmem>>, %arg6: memref<8x32xf32, #tpu.memory_space<vmem>>, %arg7: memref<8x8xf32, #tpu.memory_space<vmem>>, %arg8: memref<8x32xf32, #tpu.memory_space<vmem>>) attributes {dimension_semantics = [#tpu.dimension_semantics<parallel>], iteration_bounds = array<i64: 1>, scalar_prefetch = 0 : i64, scratch_operands = 0 : i64, tpu.core_type = #tpu.core_type<tc>, window_params = [{transform_indices = @transform_0, window_bounds = array<i64: 8, 32>}, {pipeline_mode = #tpu.pipeline_mode<synchronous>, transform_indices = @transform_1, window_bounds = array<i64: 32, 32>}, {pipeline_mode = #tpu.pipeline_mode<synchronous>, transform_indices = @transform_2, window_bounds = array<i64: 1, 32>}, {pipeline_mode = #tpu.pipeline_mode<synchronous>, transform_indices = @transform_3, window_bounds = array<i64: 1, 256>}, {pipeline_mode = #tpu.pipeline_mode<synchronous>, transform_indices = @transform_4, window_bounds = array<i64: 256, 8>}, {pipeline_mode = #tpu.pipeline_mode<synchronous>, transform_indices = @transform_5, window_bounds = array<i64: 8, 32>}, {transform_indices = @transform_6, window_bounds = array<i64: 8, 8>}, {transform_indices = @transform_7, window_bounds = array<i64: 8, 32>}]} {
    %c0 = arith.constant 0 : index
    %c0_0 = arith.constant 0 : index
    %0 = vector.load %arg1[%c0, %c0_0] : memref<8x32xf32, #tpu.memory_space<vmem>>, vector<8x32xf32>
    %c0_1 = arith.constant 0 : index
    %c0_2 = arith.constant 0 : index
    %1 = vector.load %arg2[%c0_1, %c0_2] : memref<32x32xf32, #tpu.memory_space<vmem>>, vector<32x32xf32>
    %cst = arith.constant dense<0.000000e+00> : vector<8x32xf32>
    %2 = tpu.matmul %0, %1, %cst {dimension_numbers = #tpu.dot_dimension_numbers<[1], [0], [0], [1], [0, 0, 1, 1], [], []>, precision = #tpu.contract_precision<fp32>} : vector<8x32xf32>, vector<32x32xf32>, vector<8x32xf32> -> vector<8x32xf32>
    %c0_3 = arith.constant 0 : index
    %c0_4 = arith.constant 0 : index
    %3 = vector.load %arg3[%c0_3, %c0_4] : memref<1x32xf32, #tpu.memory_space<vmem>>, vector<1x32xf32>
    %4 = vector.broadcast %3 : vector<1x32xf32> to vector<8x32xf32>
    %5 = arith.addf %2, %4 : vector<8x32xf32>
    %6 = tpu.concatenate %5, %5, %5, %5, %5, %5, %5, %5 in 1 : vector<8x32xf32>, vector<8x32xf32>, vector<8x32xf32>, vector<8x32xf32>, vector<8x32xf32>, vector<8x32xf32>, vector<8x32xf32>, vector<8x32xf32> -> vector<8x256xf32>
    %c0_5 = arith.constant 0 : index
    %c0_6 = arith.constant 0 : index
    %7 = vector.load %arg4[%c0_5, %c0_6] : memref<1x256xf32, #tpu.memory_space<vmem>>, vector<1x256xf32>
    %8 = vector.broadcast %7 : vector<1x256xf32> to vector<8x256xf32>
    %9 = arith.addf %6, %8 : vector<8x256xf32>
    %10 = math.tanh %9 : vector<8x256xf32>
    %c0_7 = arith.constant 0 : index
    %c0_8 = arith.constant 0 : index
    %11 = vector.load %arg5[%c0_7, %c0_8] : memref<256x8xf32, #tpu.memory_space<vmem>>, vector<256x8xf32>
    %cst_9 = arith.constant dense<0.000000e+00> : vector<8x8xf32>
    %12 = tpu.matmul %10, %11, %cst_9 {dimension_numbers = #tpu.dot_dimension_numbers<[1], [0], [0], [1], [0, 0, 1, 1], [], []>, precision = #tpu.contract_precision<fp32>} : vector<8x256xf32>, vector<256x8xf32>, vector<8x8xf32> -> vector<8x8xf32>
    %cst_10 = arith.constant dense<0xFF800000> : vector<8xf32>
    %13 = vector.multi_reduction <maximumf>, %12, %cst_10 [1] : vector<8x8xf32> to vector<8xf32>
    %14 = vector.shape_cast %13 : vector<8xf32> to vector<8x1xf32>
    %15 = vector.broadcast %14 : vector<8x1xf32> to vector<8x8xf32>
    %16 = arith.subf %12, %15 : vector<8x8xf32>
    %17 = math.exp %16 : vector<8x8xf32>
    %cst_11 = arith.constant dense<0.000000e+00> : vector<8xf32>
    %18 = vector.multi_reduction <add>, %17, %cst_11 [1] : vector<8x8xf32> to vector<8xf32>
    %19 = vector.shape_cast %18 : vector<8xf32> to vector<8x1xf32>
    %20 = vector.broadcast %19 : vector<8x1xf32> to vector<8x8xf32>
    %21 = arith.divf %17, %20 : vector<8x8xf32>
    %c0_12 = arith.constant 0 : index
    %c0_13 = arith.constant 0 : index
    %22 = vector.load %arg7[%c0_12, %c0_13] : memref<8x8xf32, #tpu.memory_space<vmem>>, vector<8x8xf32>
    tpu.vector_store %arg7[%c0_12, %c0_13], %21 {strides = array<i32>} : memref<8x8xf32, #tpu.memory_space<vmem>>, vector<8x8xf32>,
    %c0_14 = arith.constant 0 : index
    %c0_15 = arith.constant 0 : index
    %23 = vector.load %arg6[%c0_14, %c0_15] : memref<8x32xf32, #tpu.memory_space<vmem>>, vector<8x32xf32>
    %cst_16 = arith.constant dense<0.000000e+00> : vector<8x32xf32>
    %24 = tpu.matmul %21, %23, %cst_16 {dimension_numbers = #tpu.dot_dimension_numbers<[1], [0], [0], [1], [0, 0, 1, 1], [], []>, precision = #tpu.contract_precision<fp32>} : vector<8x8xf32>, vector<8x32xf32>, vector<8x32xf32> -> vector<8x32xf32>
    %c0_17 = arith.constant 0 : index
    %c0_18 = arith.constant 0 : index
    %25 = vector.load %arg8[%c0_17, %c0_18] : memref<8x32xf32, #tpu.memory_space<vmem>>, vector<8x32xf32>
    tpu.vector_store %arg8[%c0_17, %c0_18], %24 {strides = array<i32>} : memref<8x32xf32, #tpu.memory_space<vmem>>, vector<8x32xf32>,
    return
  }
  func.func @transform_0(%arg0: i32) -> (i32, i32) {
    %c0_i32 = arith.constant 0 : i32
    %c0_i32_0 = arith.constant 0 : i32
    return %arg0, %c0_i32 : i32, i32
  }
  func.func @transform_1(%arg0: i32) -> (i32, i32) {
    %c0_i32 = arith.constant 0 : i32
    %c0_i32_0 = arith.constant 0 : i32
    %c0_i32_1 = arith.constant 0 : i32
    return %c0_i32, %c0_i32_0 : i32, i32
  }
  func.func @transform_2(%arg0: i32) -> (i32, i32) {
    %c0_i32 = arith.constant 0 : i32
    %c0_i32_0 = arith.constant 0 : i32
    %c0_i32_1 = arith.constant 0 : i32
    return %c0_i32, %c0_i32_0 : i32, i32
  }
  func.func @transform_3(%arg0: i32) -> (i32, i32) {
    %c0_i32 = arith.constant 0 : i32
    %c0_i32_0 = arith.constant 0 : i32
    %c0_i32_1 = arith.constant 0 : i32
    return %c0_i32, %c0_i32_0 : i32, i32
  }
  func.func @transform_4(%arg0: i32) -> (i32, i32) {
    %c0_i32 = arith.constant 0 : i32
    %c0_i32_0 = arith.constant 0 : i32
    %c0_i32_1 = arith.constant 0 : i32
    return %c0_i32, %c0_i32_0 : i32, i32
  }
  func.func @transform_5(%arg0: i32) -> (i32, i32) {
    %c0_i32 = arith.constant 0 : i32
    %c0_i32_0 = arith.constant 0 : i32
    %c0_i32_1 = arith.constant 0 : i32
    return %c0_i32, %c0_i32_0 : i32, i32
  }
  func.func @transform_6(%arg0: i32) -> (i32, i32) {
    %c0_i32 = arith.constant 0 : i32
    %c0_i32_0 = arith.constant 0 : i32
    return %arg0, %c0_i32 : i32, i32
  }
  func.func @transform_7(%arg0: i32) -> (i32, i32) {
    %c0_i32 = arith.constant 0 : i32
    %c0_i32_0 = arith.constant 0 : i32
    return %arg0, %c0_i32 : i32, i32
  }
}

</mosaic_0001>

<bundles_post_ra>
// kernel: tpu_custom_call.1
= control target key start
LH: loop header
LB: loop body
LE: loop exit
PB: predicated region body
PF: predicated region fallthrough
CT: control target
= control target key end

     0   :  { %13 = vsyncpa [#allocation3], 0  ;;  %vm39_vm0 = vcmask 261120   ;;  %v3132_v3 = vmov 0.0   ;;  %vm2354_vm1 = vmmov 0   ;;  %s3124_s0 = inlined_call_operand.vmem [shape: f32[8,32], index: 0, kind: input, shape index: {}]   ;;  %s3125_s1 = inlined_call_operand.vmem [shape: f32[32,32], index: 1, kind: input, shape index: {}]   ;;  %s3126_s2 = inlined_call_operand.vmem [shape: f32[1,32], index: 2, kind: input, shape index: {}]   ;;  %s3127_s3 = inlined_call_operand.vmem [shape: f32[1,256], index: 3, kind: input, shape index: {}]   ;;  %s3128_s4 = inlined_call_operand.vmem [shape: f32[256,8], index: 4, kind: input, shape index: {}]   ;;  %s3129_s5 = inlined_call_operand.vmem [shape: f32[8,32], index: 5, kind: input, shape index: {}]   ;;  %s3130_s6 = inlined_call_operand.hbm [shape: f32[8,8], index: 6, kind: output, shape index: {0}]   ;;  %s3131_s7 = inlined_call_operand.hbm [shape: f32[8,32], index: 7, kind: output, shape index: {1}]  }
   0x1   :  { %v31_v0 = vld [vmem:[%s3125_s1 + $0x18] sm:$0xff]  ;;  %v30_v1 = vld [vmem:[%s3125_s1 + $0x10] sm:$0xff]  ;;  %v29_v2 = vld [vmem:[%s3125_s1 + $0x8] sm:$0xff]  ;;  %2198 = vmatprep.subr.mxu0 %v3132_v3  ;;  %2209 = vmatprep.subr.mxu1 %v3132_v3 }
   0x2   :  { %v2410_v4 = vand.u32 4294901760, %v31_v0  ;;  %v2412_v5 = vand.u32 4294901760, %v30_v1  ;;  %v2414_v6 = vand.u32 4294901760, %v29_v2  ;;  %v28_v7 = vld [vmem:[%s3125_s1] sm:$0xff]  ;;  %2206 = vmatprep.mubr.msk.f32.mxu0 %vm2354_vm1, %v3132_v3  ;;  %2217 = vmatprep.mubr.msk.f32.mxu1 %vm2354_vm1, %v3132_v3 }
   0x3   :  { %v27_v8 = vld [vmem:[%s3124_s0] sm:$0xff]  ;;  %v2423_v9 = vand.u32 4294901760, %v28_v7 }
   0x4   :  { %v41_v10 = vsel %vm39_vm0, %v27_v8, 0 }
   0x5   :  { %14 = vsyncpa [#allocation5], 0  ;;  %2199 = vmatpush3.msra.mxu0 %v2410_v4  ;;  %v148_v11 = vsub.f32 %v31_v0, %v2410_v4  ;;  %v2432_v12 = vand.u32 4294901760, %v41_v10  ;;  %v155_v13 = vsub.f32 %v30_v1, %v2412_v5  ;;  %v162_v14 = vsub.f32 %v29_v2, %v2414_v6  ;;  %v590_v32 = vld [vmem:[%s3128_s4 + $0xf8] sm:$0xff]  ;;  %v589_v34 = vld [vmem:[%s3128_s4 + $0xf0] sm:$0xff]  ;;  %s2355_s13 = smov 96  }
   0x6   :  { %2200 = vmatprep.subr.mxu0 %v3132_v3  ;;  %v169_v15 = vsub.f32 %v28_v7, %v2423_v9  ;;  %v574_v33 = vld [vmem:[%s3128_s4 + $0x78] sm:$0xff]  ;;  %v2491_v35 = vand.u32 4294901760, %v590_v32  ;;  %v2495_v37 = vand.u32 4294901760, %v589_v34  ;;  %v573_v38 = vld [vmem:[%s3128_s4 + $0x70] sm:$0xff]  ;;  %v588_v39 = vld [vmem:[%s3128_s4 + $0xe8] sm:$0xff]  ;;  %s2356_s14 = smov 32  }
   0x7   :  { %2201 = vmatpush3.msra.mxu0 %v2412_v5  ;;  %v149_v16 = vand.u32 4294901760, %v148_v11  ;;  %v113_v17 = vsub.f32 %v41_v10, %v2432_v12  ;;  %v156_v18 = vand.u32 4294901760, %v155_v13  ;;  %v163_v19 = vand.u32 4294901760, %v162_v14  ;;  %v572_v40 = vld [vmem:[%s3128_s4 + $0x68] sm:$0xff]  ;;  %v587_v44 = vld [vmem:[%s3128_s4 + $0xe0] sm:$0xff]  ;;  %s2357_s23 = smov 64  }
   0x8   :  { %2202 = vmatprep.subr.mxu0 %v3132_v3  ;;  %v170_v20 = vand.u32 4294901760, %v169_v15  ;;  %v2493_v36 = vand.u32 4294901760, %v574_v33  ;;  %v2506_v41 = vand.u32 4294901760, %v573_v38  ;;  %v2508_v42 = vand.u32 4294901760, %v588_v39  ;;  %v571_v45 = vld [vmem:[%s3128_s4 + $0x60] sm:$0xff] }
   0x9   :  { %2203 = vmatpush3.msra.mxu0 %v2414_v6  ;;  %v150_v21 = vsub.f32 %v148_v11, %v149_v16  ;;  %v114_v22 = vand.u32 4294901760, %v113_v17  ;;  %v157_v23 = vsub.f32 %v155_v13, %v156_v18  ;;  %v164_v24 = vsub.f32 %v162_v14, %v163_v19 }
   0xa   :  { %2204 = vmatprep.subr.mxu0 %v3132_v3  ;;  %v171_v28 = vsub.f32 %v169_v15, %v170_v20  ;;  %v2510_v43 = vand.u32 4294901760, %v572_v40  ;;  %v2519_v46 = vsub.f32 %v590_v32, %v2491_v35  ;;  %v2522_v47 = vsub.f32 %v574_v33, %v2493_v36 }
   0xb   :  { %2205 = vmatpush3.msra.mxu0 %v2423_v9  ;;  %v151_v25 = vand.u32 4294901760, %v150_v21  ;;  %v115_v26 = vsub.f32 %v113_v17, %v114_v22  ;;  %v158_v27 = vand.u32 4294901760, %v157_v23  ;;  %v165_v30 = vand.u32 4294901760, %v164_v24  ;;  %v570_v24 = vld [vmem:[%s3128_s4 + $0x58] sm:$0xff] }
   0xc   :  { %2220 = vmatprep.subr.mxu0 %v3132_v3  ;;  %v172_v31 = vand.u32 4294901760, %v171_v28  ;;  %3198 = vst [vmem:[#allocation8_spill] sm:$0xff] %v2519_v46  ;;  %v2525_v48 = vsub.f32 %v589_v34, %v2495_v37  ;;  %v2527_v49 = vand.u32 4294901760, %v587_v44  ;;  %v2531_v50 = vsub.f32 %v573_v38, %v2506_v41 }
   0xd   :  { %2210 = vmatpush3.msra.mxu1 %v151_v25  ;;  %v116_v29 = vand.u32 4294901760, %v115_v26  ;;  %v2534_v51 = vsub.f32 %v588_v39, %v2508_v42  ;;  %v2537_v52 = vsub.f32 %v572_v40, %v2510_v43  ;;  %v2539_v53 = vand.u32 4294901760, %v571_v45  ;;  %v585_v26 = vld [vmem:[%s3128_s4 + $0xd0] sm:$0xff]  ;;  %v584_v40 = vld [vmem:[%s3128_s4 + $0xc8] sm:$0xff] }
   0xe   :  { %2211 = vmatprep.subr.mxu1 %v3132_v3  ;;  %v3151_v54 = vand.u32 4294901760, %v2519_v46  ;;  %v3150_v55 = vand.u32 4294901760, %v2522_v47  ;;  %v3149_v56 = vand.u32 4294901760, %v2525_v48  ;;  %v2546_v57 = vsub.f32 %v587_v44, %v2527_v49 }
   0xf   :  { %2207 = vmatmul.mubr.f32.vlgmr.msra.gmra.mxu0 %v116_v29  ;;  %2212 = vmatpush3.msra.mxu1 %v158_v27  ;;  %v3148_v58 = vand.u32 4294901760, %v2531_v50  ;;  %v3147_v59 = vand.u32 4294901760, %v2534_v51  ;;  %v3146_v60 = vand.u32 4294901760, %v2537_v52  ;;  %v2553_v61 = vsub.f32 %v571_v45, %v2539_v53 }
  0x10   :  { %2221 = vmatpush3.msra.mxu0 %v148_v11  ;;  %2213 = vmatprep.subr.mxu1 %v3132_v3  ;;  %v819_v62 = vsub.f32 %v2519_v46, %v3151_v54  ;;  %v707_v63 = vsub.f32 %v2522_v47, %v3150_v55  ;;  %v826_v0 = vsub.f32 %v2525_v48, %v3149_v56  ;;  %v3143_v1 = vand.u32 4294901760, %v2546_v57 }
  0x11   :  { %2222 = vmatprep.subr.mxu0 %v3132_v3  ;;  %2214 = vmatpush3.msra.mxu1 %v165_v30  ;;  %v714_v2 = vsub.f32 %v2531_v50, %v3148_v58  ;;  %v2597_v25 = vand.u32 4294901760, %v570_v24  ;;  %v2605_v29 = vand.u32 4294901760, %v585_v26  ;;  %v569_v30 = vld [vmem:[%s3128_s4 + $0x50] sm:$0xff]  ;;  %vm539_vm2 = vcmask 523264  }
  0x12   :  { %2223 = vmatpush3.msra.mxu0 %v155_v13  ;;  %2215 = vmatprep.subr.mxu1 %v3132_v3  ;;  %v820_v7 = vand.u32 4294901760, %v819_v62  ;;  %v708_v8 = vand.u32 4294901760, %v707_v63  ;;  %v840_v10 = vsub.f32 %v2546_v57, %v3143_v1  ;;  %v2614_v32 = vand.u32 4294901760, %v569_v30  ;;  %v568_v63 = vld [vmem:[%s3128_s4 + $0x48] sm:$0xff] }
  0x13   :  { %2224 = vmatprep.subr.mxu0 %v3132_v3  ;;  %2216 = vmatpush3.msra.mxu1 %v172_v31  ;;  %v715_v11 = vand.u32 4294901760, %v714_v2  ;;  %v2612_v31 = vsub.f32 %v570_v24, %v2597_v25  ;;  %v2619_v39 = vsub.f32 %v585_v26, %v2605_v29  ;;  %v2629_v62 = vand.u32 4294901760, %v584_v40  ;;  %v582_v24 = vld [vmem:[%s3128_s4 + $0xb8] sm:$0xff] }
  0x14   :  { %2225 = vmatpush3.msra.mxu0 %v162_v14  ;;  %2218 = vmatmul.mubr.f32.vlgmr.msra.gmra.mxu1 %v2432_v12  ;;  %v2627_v45 = vsub.f32 %v569_v30, %v2614_v32  ;;  %v566_v26 = vld [vmem:[%s3128_s4 + $0x38] sm:$0xff]  ;;  %vm541_vm3 = vcmask 785408   ;;  %vm1453_vm4 = vcmask 64512  }
  0x15   :  { %2226 = vmatprep.subr.mxu0 %v3132_v3  ;;  %2231 = vmatprep.subr.mxu1 %v3132_v3  ;;  %v3139_v44 = vand.u32 4294901760, %v2612_v31 }
  0x16   :  { %2227 = vmatpush3.msra.mxu0 %v169_v15  ;;  %2232 = vmatpush3.msra.mxu1 %v2410_v4  ;;  %v841_v15 = vand.u32 4294901760, %v840_v10  ;;  %v2649_v10 = vsub.f32 %v584_v40, %v2629_v62 }
  0x17   :  { %2228 = vmatprep.mubr.msk.f32.mxu0 %vm2354_vm1, %v3132_v3  ;;  %2233 = vmatprep.subr.mxu1 %v3132_v3 }
  0x18   :  { %2242 = vmatprep.subr.mxu0 %v3132_v3  ;;  %2229 = vmatmul.mubr.f32.vlgmr.msra.gmra.mxu0 %v113_v17 }
  0x19   :  { %2234 = vmatpush3.msra.mxu1 %v2412_v5  ;;  %2243 = vmatpush3.msra.mxu0 %v149_v16 }
  0x1a   :  { %2235 = vmatprep.subr.mxu1 %v3132_v3  ;;  %2244 = vmatprep.subr.mxu0 %v3132_v3 }
  0x1b   :  { %2236 = vmatpush3.msra.mxu1 %v2414_v6  ;;  %2245 = vmatpush3.msra.mxu0 %v156_v18  ;;  %v1945_v18 = vld [vmem:[%s3126_s2] ss:$0 sm:$0xff] }
  0x1c   :  { %2237 = vmatprep.subr.mxu1 %v3132_v3  ;;  %2246 = vmatprep.subr.mxu0 %v3132_v3 }
  0x1d   :  { %2238 = vmatpush3.msra.mxu1 %v2423_v9  ;;  %2239 = vmatprep.mubr.msk.f32.mxu1 %vm2354_vm1, %v3132_v3 }
  0x1e   :  { %2247 = vmatpush3.msra.mxu0 %v163_v19  ;;  %2240 = vmatmul.mubr.f32.vlgmr.msra.gmra.mxu1 %v114_v22 }
  0x1f   :  { %2248 = vmatprep.subr.mxu0 %v3132_v3  ;;  %2253 = vmatprep.subr.mxu1 %v3132_v3 }
  0x20   :  { %2249 = vmatpush3.msra.mxu0 %v170_v20  ;;  %2250 = vmatprep.mubr.msk.f32.mxu0 %vm2354_vm1, %v3132_v3  ;;  %v586_v20 = vld [vmem:[%s3128_s4 + $0xd8] sm:$0xff] }
  0x21   :  { %2254 = vmatpush3.msra.mxu1 %v2410_v4  ;;  %2251 = vmatmul.mubr.f32.vlgmr.msra.gmra.mxu0 %v2432_v12  ;;  %v833_v4 = vsub.f32 %v2534_v51, %v3147_v59  ;;  %v2592_v23 = vand.u32 4294901760, %v586_v20 }
  0x22   :  { %2255 = vmatprep.subr.mxu1 %v3132_v3  ;;  %2261 = vmatprep.mubr.msk.f32.mxu1 %vm2354_vm1, %v3132_v3 }
  0x23   :  { %2256 = vmatpush3.msra.mxu1 %v2412_v5  ;;  %1976 = vmatprep.subr.mxu0 %v2491_v35  ;;  %v721_v5 = vsub.f32 %v2537_v52, %v3146_v60  ;;  %v834_v13 = vand.u32 4294901760, %v833_v4  ;;  %v2603_v28 = vsub.f32 %v586_v20, %v2592_v23  ;;  %v3138_v4 = vand.u32 4294901760, %v2619_v39  ;;  %v567_v20 = vld [vmem:[%s3128_s4 + $0x40] sm:$0xff] }
  0x24   :  { %2257 = vmatprep.subr.mxu1 %v3132_v3  ;;  %1977 = vmatpush3.msra.mxu0 %v2493_v36 }
  0x25   :  { %2258 = vmatpush3.msra.mxu1 %v2414_v6  ;;  %1978 = vmatprep.subr.mxu0 %v2495_v37  ;;  %v3141_v6 = vand.u32 4294901760, %v2553_v61  ;;  %v722_v14 = vand.u32 4294901760, %v721_v5  ;;  %v3140_v38 = vand.u32 4294901760, %v2603_v28  ;;  %v2639_v5 = vand.u32 4294901760, %v568_v63 }
  0x26   :  { %2259 = vmatprep.subr.mxu1 %v3132_v3  ;;  %1979 = vmatpush3.msra.mxu0 %v2506_v41 }
  0x27   :  { %2260 = vmatpush3.msra.mxu1 %v2423_v9  ;;  %1980 = vmatprep.subr.mxu0 %v2508_v42  ;;  %v827_v9 = vand.u32 4294901760, %v826_v0  ;;  %v847_v2 = vsub.f32 %v2603_v28, %v3140_v38 }
  0x28   :  { %2262 = vmatmul.mubr.f32.vlgmr.msra.gmra.mxu1 %v2432_v12  ;;  %1981 = vmatpush3.msra.mxu0 %v2510_v43  ;;  %v728_v12 = vsub.f32 %v2553_v61, %v3141_v6 }
  0x29   :  { %1982 = vmatprep.subr.mxu0 %v2527_v49  ;;  %2011 = vmatprep.subr.mxu1 %v820_v7  ;;  %v583_v7 = vld [vmem:[%s3128_s4 + $0xc0] sm:$0xff] }
  0x2a   :  { %1983 = vmatpush3.msra.mxu0 %v2539_v53  ;;  %2012 = vmatpush3.msra.mxu1 %v708_v8  ;;  %v729_v16 = vand.u32 4294901760, %v728_v12  ;;  %v735_v8 = vsub.f32 %v2612_v31, %v3139_v44 }
  0x2b   :  { %2013 = vmatprep.subr.mxu1 %v827_v9  ;;  %1984 = vmatprep.subr.mxu0 %v2592_v23  ;;  %v3137_v9 = vand.u32 4294901760, %v2627_v45 }
  0x2c   :  { %2014 = vmatpush3.msra.mxu1 %v715_v11  ;;  %1985 = vmatpush3.msra.mxu0 %v2597_v25  ;;  %v2651_v11 = vand.u32 4294901760, %v583_v7 }
  0x2d   :  { %2015 = vmatprep.subr.mxu1 %v834_v13  ;;  %1986 = vmatprep.subr.mxu0 %v2605_v29  ;;  %v848_v13 = vand.u32 4294901760, %v847_v2 }
  0x2e   :  { %2016 = vmatpush3.msra.mxu1 %v722_v14  ;;  %1987 = vmatpush3.msra.mxu0 %v2614_v32  ;;  %v854_v14 = vsub.f32 %v2619_v39, %v3138_v4 }
  0x2f   :  { %2017 = vmatprep.subr.mxu1 %v841_v15  ;;  %1988 = vmatprep.subr.mxu0 %v2629_v62  ;;  %v2658_v15 = vsub.f32 %v568_v63, %v2639_v5 }
  0x30   :  { %2018 = vmatpush3.msra.mxu1 %v729_v16  ;;  %1989 = vmatpush3.msra.mxu0 %v2639_v5  ;;  %v736_v16 = vand.u32 4294901760, %v735_v8 }
  0x31   :  { %1990 = vmatprep.subr.mxu0 %v2651_v11  ;;  %2019 = vmatprep.subr.mxu1 %v848_v13  ;;  %v2690_v13 = vand.u32 4294901760, %v566_v26 }
  0x32   :  { %2020 = vmatpush3.msra.mxu1 %v736_v16  ;;  %v565_v16 = vld [vmem:[%s3128_s4 + $0x30] sm:$0xff] }
  0xcf   :  { %v118_v17 = vpop.f32.mrf.mxu0 }
  0xd0   :  { %v119_v21 = vadd.f32 %v1945_v18, %v118_v17  ;;  %v742_v17 = vsub.f32 %v2627_v45, %v3137_v9  ;;  %v3136_v18 = vand.u32 4294901760, %v2649_v10 }
  0xd1   :  { %v2208_v19 = vpop.f32.mrf.mxu0 }
  0xd2   :  { %v2666_v19 = vsub.f32 %v583_v7, %v2651_v11  ;;  %v743_v30 = vand.u32 4294901760, %v742_v17  ;;  %v580_v17 = vld [vmem:[%s3128_s4 + $0xa8] sm:$0xff] }
  0xd4   :  { %v209_v22 = vpop.f32.mrf.mxu1  ;;  %v3135_v63 = vand.u32 4294901760, %v2666_v19 }
  0xd5   :  { %v210_v33 = vadd.f32 %v209_v22, %v119_v21  ;;  %v855_v22 = vand.u32 4294901760, %v854_v14  ;;  %v581_v14 = vld [vmem:[%s3128_s4 + $0xb0] sm:$0xff] }
  0xd6   :  { %v2219_v27 = vpop.f32.mrf.mxu1 }
  0xd7   :  { %2021 = vmatprep.subr.mxu1 %v855_v22  ;;  %v868_v22 = vsub.f32 %v2666_v19, %v3135_v63 }
  0xd8   :  { %v289_v34 = vpop.f32.mrf.mxu0  ;;  %2022 = vmatpush3.msra.mxu1 %v743_v30  ;;  %v564_v30 = vld [vmem:[%s3128_s4 + $0x28] sm:$0xff] }
  0xd9   :  { %v290_v12 = vadd.f32 %v289_v34, %v210_v33  ;;  %v861_v33 = vsub.f32 %v2649_v10, %v3136_v18  ;;  %v3134_v34 = vand.u32 4294901760, %v2658_v15  ;;  %v869_v63 = vand.u32 4294901760, %v868_v22 }
  0xda   :  { %v2230_v0 = vpop.f32.mrf.mxu0  ;;  %v2721_v18 = vand.u32 4294901760, %v581_v14 }
  0xdb   :  { %v2683_v0 = vand.u32 4294901760, %v567_v20  ;;  %v862_v7 = vand.u32 4294901760, %v861_v33  ;;  %v749_v8 = vsub.f32 %v2658_v15, %v3134_v34 }
  0xdc   :  { %v2734_v22 = vsub.f32 %v581_v14, %v2721_v18 }
  0xdd   :  { %1991 = vmatpush3.msra.mxu0 %v2683_v0  ;;  %2023 = vmatprep.subr.mxu1 %v862_v7  ;;  %v2709_v3 = vsub.f32 %v567_v20, %v2683_v0  ;;  %v2723_v7 = vand.u32 4294901760, %v565_v16 }
  0xde   :  { %v366_v21 = vpop.f32.mrf.mxu1  ;;  %3202 = vst [vmem:[#allocation12_spill] sm:$0xff] %v2734_v22  ;;  %v3156_v38 = vand.u32 4294901760, %v2734_v22 }
  0xdf   :  { %v367_v27 = vadd.f32 %v366_v21, %v290_v12  ;;  %v2688_v12 = vand.u32 4294901760, %v582_v24  ;;  %3199 = vst [vmem:[#allocation9_spill] sm:$0xff] %v2709_v3  ;;  %v3142_v20 = vand.u32 4294901760, %v2709_v3  ;;  %v2737_v9 = vsub.f32 %v565_v16, %v2723_v7 }
  0xe0   :  { %v2241_v40 = vpop.f32.mrf.mxu1  ;;  %v882_v55 = vsub.f32 %v2734_v22, %v3156_v38 }
  0xe1   :  { %v449_v2 = vpop.f32.mrf.mxu0  ;;  %v750_v40 = vand.u32 4294901760, %v749_v8  ;;  %v2712_v34 = vsub.f32 %v582_v24, %v2688_v12  ;;  %1992 = vmatprep.subr.mxu0 %v2688_v12  ;;  %v2725_v8 = vand.u32 4294901760, %v580_v17  ;;  %3203 = vst [vmem:[#allocation13_spill] sm:$0xff] %v2737_v9  ;;  %v3155_v6 = vand.u32 4294901760, %v2737_v9 }
  0xe2   :  { %v450_v21 = vadd.f32 %v449_v2, %v367_v27  ;;  %v2715_v27 = vsub.f32 %v566_v26, %v2690_v13  ;;  %v579_v2 = vld [vmem:[%s3128_s4 + $0xa0] sm:$0xff]  ;;  %1993 = vmatpush3.msra.mxu0 %v2690_v13  ;;  %v883_v38 = vand.u32 4294901760, %v882_v55 }
  0xe3   :  { %v2252_v33 = vpop.f32.mrf.mxu0  ;;  %3200 = vst [vmem:[#allocation10_spill] sm:$0xff] %v2712_v34  ;;  %2024 = vmatpush3.msra.mxu1 %v750_v40  ;;  %v3144_v24 = vand.u32 4294901760, %v2712_v34  ;;  %v2740_v4 = vsub.f32 %v580_v17, %v2725_v8  ;;  %v2742_v44 = vand.u32 4294901760, %v579_v2  ;;  %1994 = vmatprep.subr.mxu0 %v2721_v18  ;;  %v756_v40 = vsub.f32 %v2709_v3, %v3142_v20 }
  0xe4   :  { %3201 = vst [vmem:[#allocation11_spill] sm:$0xff] %v2715_v27  ;;  %v3145_v26 = vand.u32 4294901760, %v2715_v27  ;;  %v2731_v33 = vand.u32 4294901760, %v564_v30  ;;  %2025 = vmatprep.subr.mxu1 %v869_v63  ;;  %1995 = vmatpush3.msra.mxu0 %v2723_v7  ;;  %v770_v54 = vsub.f32 %v2737_v9, %v3155_v6  ;;  %v576_v6 = vld [vmem:[%s3128_s4 + $0x88] sm:$0xff] }
  0xe5   :  { %3204 = vst [vmem:[#allocation14_spill] sm:$0xff] %v2740_v4  ;;  %3205 = vst [vmem:[#allocation15_spill] sm:$0xff] %v2742_v44  ;;  %v875_v63 = vsub.f32 %v2712_v34, %v3144_v24  ;;  %v3154_v20 = vand.u32 4294901760, %v2740_v4  ;;  %v2762_v1 = vsub.f32 %v579_v2, %v2742_v44  ;;  %v563_v24 = vld [vmem:[%s3128_s4 + $0x20] sm:$0xff]  ;;  %1996 = vmatprep.subr.mxu0 %v2725_v8  ;;  %v757_v59 = vand.u32 4294901760, %v756_v40  ;;  %v577_v40 = vld [vmem:[%s3128_s4 + $0x90] sm:$0xff] }
  0xe6   :  { %v763_v14 = vsub.f32 %v2715_v27, %v3145_v26  ;;  %v2755_v16 = vsub.f32 %v564_v30, %v2731_v33  ;;  %v578_v30 = vld [vmem:[%s3128_s4 + $0x98] sm:$0xff]  ;;  %1997 = vmatpush3.msra.mxu0 %v2731_v33 }
  0xe7   :  { %3207 = vst [vmem:[#allocation17_spill] sm:$0xff] %v2762_v1  ;;  %v562_v26 = vld [vmem:[%s3128_s4 + $0x18] sm:$0xff]  ;;  %v876_v58 = vand.u32 4294901760, %v875_v63  ;;  %v889_v27 = vsub.f32 %v2740_v4, %v3154_v20  ;;  %1998 = vmatprep.subr.mxu0 %v2742_v44  ;;  %v2794_v63 = vand.u32 4294901760, %v563_v24  ;;  %v561_v20 = vld [vmem:[%s3128_s4 + $0x10] sm:$0xff]  ;;  %2026 = vmatpush3.msra.mxu1 %v757_v59  ;;  %v3210_v22 = vand.u32 4294901760, %v2762_v1 }
  0xe8   :  { %3206 = vst [vmem:[#allocation16_spill] sm:$0xff] %v2755_v16  ;;  %v524_v17 = vpop.f32.mrf.mxu1  ;;  %v764_v2 = vand.u32 4294901760, %v763_v14  ;;  %v2796_v14 = vand.u32 4294901760, %v578_v30 }
  0xe9   :  { %v2774_v60 = vadd.f32 %v524_v17, %v450_v21  ;;  %3208 = vst [vmem:[#allocation18_spill] sm:$0xff] %v2794_v63  ;;  %v2798_v17 = vand.u32 4294901760, %v562_v26  ;;  %v771_v21 = vand.u32 4294901760, %v770_v54  ;;  %v890_v4 = vand.u32 4294901760, %v889_v27  ;;  %2027 = vmatprep.subr.mxu1 %v876_v58  ;;  %v560_v54 = vld [vmem:[%s3128_s4 + $0x8] sm:$0xff]  ;;  %1999 = vmatpush3.msra.mxu0 %v2794_v63 }
  0xea   :  { %v2263_v56 = vpop.f32.mrf.mxu1  ;;  %v896_v34 = vsub.f32 %v2762_v1, %v3210_v22  ;;  %v2813_v3 = vsub.f32 %v563_v24, %v2794_v63  ;;  %v2816_v44 = vsub.f32 %v578_v30, %v2796_v14  ;;  %2028 = vmatpush3.msra.mxu1 %v764_v2  ;;  %v2824_v58 = vand.u32 4294901760, %v577_v40  ;;  %v575_v24 = vld [vmem:[%s3128_s4 + $0x80] sm:$0xff]  ;;  %2000 = vmatprep.subr.mxu0 %v2796_v14 }
  0xeb   :  { %535 = vrot.lane.b32.xlu1 %v2774_v60, %s2355_s13  ;;  %529 = vrot.lane.b32.xlu0 %v2774_v60, %s2356_s14  ;;  %v3209_v56 = vand.u32 4294901760, %v2755_v16  ;;  %v2819_v59 = vsub.f32 %v562_v26, %v2798_v17  ;;  %v2826_v27 = vand.u32 4294901760, %v561_v20  ;;  %v2828_v22 = vand.u32 4294901760, %v576_v6 }
  0xec   :  { %3211 = vst [vmem:[#allocation19_spill] sm:$0xff] %v2813_v3  ;;  %3212 = vst [vmem:[#allocation20_spill] sm:$0xff] %v2816_v44  ;;  %2029 = vmatprep.subr.mxu1 %v883_v38  ;;  %v897_v26 = vand.u32 4294901760, %v896_v34  ;;  %v3175_v30 = vand.u32 4294901760, %v2813_v3  ;;  %v2847_v63 = vand.u32 4294901760, %v560_v54  ;;  %2001 = vmatpush3.msra.mxu0 %v2798_v17 }
  0xed   :  { %v777_v9 = vsub.f32 %v2755_v16, %v3209_v56  ;;  %3213 = vst [vmem:[#allocation21_spill] sm:$0xff] %v2819_v59  ;;  %v3177_v2 = vand.u32 4294901760, %v2819_v59  ;;  %2030 = vmatpush3.msra.mxu1 %v771_v21  ;;  %v2839_v56 = vsub.f32 %v577_v40, %v2824_v58  ;;  %v2842_v1 = vsub.f32 %v561_v20, %v2826_v27 }
  0xee   :  { %v2845_v16 = vsub.f32 %v576_v6, %v2828_v22  ;;  %2031 = vmatprep.subr.mxu1 %v890_v4  ;;  %v784_v38 = vsub.f32 %v2813_v3, %v3175_v30  ;;  %v2859_v21 = vand.u32 4294901760, %v575_v24  ;;  %v2866_v30 = vsub.f32 %v560_v54, %v2847_v63  ;;  %2002 = vmatprep.subr.mxu0 %v2824_v58 }
  0xef   :  { %v778_v55 = vand.u32 4294901760, %v777_v9  ;;  %532 = vrot.lane.b32.xlu0 %v2774_v60, %s2357_s23  ;;  %v3176_v9 = vand.u32 4294901760, %v2816_v44  ;;  %3214 = vst [vmem:[#allocation22_spill] sm:$0xff] %v2839_v56  ;;  %v791_v20 = vsub.f32 %v2819_v59, %v3177_v2  ;;  %v3184_v6 = vand.u32 4294901760, %v2839_v56  ;;  %2003 = vmatpush3.msra.mxu0 %v2826_v27 }
  0xf0   :  { %v3187_v4 = vand.u32 4294901760, %v2842_v1  ;;  %3215 = vst [vmem:[#allocation23_spill] sm:$0xff] %v2866_v30  ;;  %v785_v2 = vand.u32 4294901760, %v784_v38  ;;  %v3217_v3 = vand.u32 4294901760, %v2845_v16  ;;  %v3189_v38 = vand.u32 4294901760, %v2866_v30  ;;  %2004 = vmatprep.subr.mxu0 %v2828_v22 }
  0xf1   :  { %v903_v34 = vsub.f32 %v2816_v44, %v3176_v9  ;;  %2032 = vmatpush3.msra.mxu1 %v778_v55  ;;  %v559_v9 = vld [vmem:[%s3128_s4] sm:$0xff]  ;;  %v792_v44 = vand.u32 4294901760, %v791_v20  ;;  %v2873_v55 = vsub.f32 %v575_v24, %v2859_v21  ;;  %v910_v54 = vsub.f32 %v2839_v56, %v3184_v6  ;;  %2005 = vmatpush3.msra.mxu0 %v2847_v63 }
  0xf2   :  { %2033 = vmatprep.subr.mxu1 %v897_v26  ;;  %v798_v40 = vsub.f32 %v2842_v1, %v3187_v4  ;;  %v917_v26 = vsub.f32 %v2845_v16, %v3217_v3  ;;  %v805_v4 = vsub.f32 %v2866_v30, %v3189_v38  ;;  %2006 = vmatprep.subr.mxu0 %v2859_v21 }
  0xf3   :  { %v904_v59 = vand.u32 4294901760, %v903_v34  ;;  %3216 = vst [vmem:[#allocation24_spill] sm:$0xff] %v2873_v55  ;;  %2034 = vmatpush3.msra.mxu1 %v785_v2  ;;  %v3188_v24 = vand.u32 4294901760, %v2873_v55  ;;  %v2888_v34 = vand.u32 4294901760, %v559_v9  ;;  %v911_v20 = vand.u32 4294901760, %v910_v54 }
  0xf4   :  { %v799_v6 = vand.u32 4294901760, %v798_v40  ;;  %v918_v56 = vand.u32 4294901760, %v917_v26 }
  0xf5   :  { %2035 = vmatprep.subr.mxu1 %v904_v59  ;;  %v924_v3 = vsub.f32 %v2873_v55, %v3188_v24  ;;  %v2899_v2 = vsub.f32 %v559_v9, %v2888_v34  ;;  %2007 = vmatpush3.msra.mxu0 %v2888_v34  ;;  %v806_v59 = vand.u32 4294901760, %v805_v4  ;;  %v545_v9 = vlaneseq }
  0xf6   :  { %2036 = vmatpush3.msra.mxu1 %v792_v44  ;;  %2046 = vmatprep.subr.mxu0 %v2519_v46 }
  0xf7   :  { %3218 = vst [vmem:[#allocation25_spill] sm:$0xff] %v2899_v2  ;;  %2037 = vmatprep.subr.mxu1 %v911_v20  ;;  %v925_v40 = vand.u32 4294901760, %v924_v3  ;;  %v3190_v54 = vand.u32 4294901760, %v2899_v2  ;;  %v546_v20 = vshrl.u32 %v545_v9, 7 }
  0xf8   :  { %2038 = vmatpush3.msra.mxu1 %v799_v6  ;;  %v543_v6 = vld [vmem:[%s3127_s3] sm:$0x3] }
  0xf9   :  { %2039 = vmatprep.subr.mxu1 %v918_v56  ;;  %v812_v44 = vsub.f32 %v2899_v2, %v3190_v54  ;;  %v547_v4 = vsub.s32 0, %v546_v20  ;;  %v551_v24 = vsub.s32 1, %v546_v20 }
  0xfa   :  { %2040 = vmatpush3.msra.mxu1 %v806_v59 }
  0xfb   :  { %2041 = vmatprep.subr.mxu1 %v925_v40  ;;  %v813_v26 = vand.u32 4294901760, %v812_v44  ;;  %v548_v56 = vrot.slane %v543_v6, %v547_v4  ;;  %v552_v3 = vrot.slane %v543_v6, %v551_v24 }
  0xfd   :  { %2042 = vmatpush3.msra.mxu1 %v813_v26 }
  0xfe   :  { %2081 = vmatprep.subr.mxu1 %v2491_v35 }
 0x15d   :  { %v530_v38 = vpop.permute.xlu0 %529  ;;  %v536_v44 = vpop.permute.xlu1 %535 }
 0x15e   :  { %v538_v59 = vsel %vm39_vm0, %v2774_v60, %v530_v38 }
 0x161   :  { %v533_v40 = vpop.permute.xlu0 %532 }
 0x162   :  { %v540_v26 = vsel %vm539_vm2, %v538_v59, %v533_v40  ;;  %v3221_v59 = vld [vmem:[#allocation18_spill] sm:$0xff] }
 0x163   :  { %v542_v54 = vsel %vm541_vm3, %v540_v26, %v536_v44  ;;  %v3222_v40 = vld [vmem:[#allocation10_spill] sm:$0xff]  ;;  %v3223_v44 = vld [vmem:[#allocation11_spill] sm:$0xff]  ;;  %v3224_v26 = vld [vmem:[#allocation12_spill] sm:$0xff] }
 0x164   :  { %v555_v46 = vadd.f32 %v548_v56, %v542_v54  ;;  %v556_v9 = vadd.f32 %v552_v3, %v542_v54  ;;  %v3219_v56 = vld [vmem:[#allocation15_spill] sm:$0xff]  ;;  %v3220_v3 = vld [vmem:[#allocation9_spill] sm:$0xff] }
 0x166   :  { %2301 = vtanh.f32 %v555_v46 }
 0x167   :  { %2303 = vtanh.f32 %v556_v9  ;;  %v3225_v9 = vld [vmem:[#allocation13_spill] sm:$0xff] }
 0x173   :  { %v2302_v20 = vpop.eup %2301 }
 0x174   :  { %v2304_v2 = vpop.eup %2303  ;;  %v2913_v55 = vand.u32 4294901760, %v2302_v20 }
 0x175   :  { %v2915_v30 = vand.u32 4294901760, %v2304_v2 }
 0x176   :  { %v2918_v4 = vsub.f32 %v2302_v20, %v2913_v55  ;;  %v3226_v20 = vld [vmem:[#allocation14_spill] sm:$0xff] }
 0x177   :  { %928 = vmatprep.mubr.f32.mxu1 %v2915_v30  ;;  %v688_v60 = vsub.f32 %v2304_v2, %v2915_v30 }
 0x178   :  { %930 = vmatmul.mubr.f32.vlgmr.msra.gmra.mxu1 %v2913_v55  ;;  %v695_v38 = vand.u32 4294901760, %v2918_v4 }
 0x179   :  { %2082 = vmatpush3.msra.mxu1 %v2493_v36  ;;  %v689_v46 = vand.u32 4294901760, %v688_v60 }
 0x17a   :  { %2083 = vmatprep.subr.mxu1 %v2495_v37  ;;  %v696_v24 = vsub.f32 %v2918_v4, %v695_v38 }
 0x17b   :  { %2084 = vmatpush3.msra.mxu1 %v2506_v41  ;;  %1172 = vmatprep.mubr.f32.mxu1 %v689_v46  ;;  %v690_v54 = vsub.f32 %v688_v60, %v689_v46  ;;  %v3228_v46 = vld [vmem:[#allocation17_spill] sm:$0xff] }
 0x17c   :  { %2085 = vmatprep.subr.mxu1 %v2508_v42  ;;  %v697_v2 = vand.u32 4294901760, %v696_v24  ;;  %v3229_v24 = vld [vmem:[#allocation19_spill] sm:$0xff] }
 0x17d   :  { %2086 = vmatpush3.msra.mxu1 %v2510_v43  ;;  %v691_v6 = vand.u32 4294901760, %v690_v54  ;;  %v3230_v54 = vld [vmem:[#allocation20_spill] sm:$0xff] }
 0x17e   :  { %2087 = vmatprep.subr.mxu1 %v2527_v49 }
 0x17f   :  { %2088 = vmatpush3.msra.mxu1 %v2539_v53  ;;  %692 = vmatprep.mubr.f32.mxu0 %v691_v6  ;;  %v3232_v6 = vld [vmem:[#allocation22_spill] sm:$0xff] }
 0x180   :  { %2089 = vmatprep.subr.mxu1 %v2592_v23  ;;  %698 = vmatmul.mubr.f32.vlgmr.msra.gmra.mxu0 %v697_v2  ;;  %v3231_v2 = vld [vmem:[#allocation21_spill] sm:$0xff] }
 0x181   :  { %2047 = vmatpush3.msra.mxu0 %v2522_v47  ;;  %2090 = vmatpush3.msra.mxu1 %v2597_v25 }
 0x182   :  { %2048 = vmatprep.subr.mxu0 %v2525_v48  ;;  %1065 = vmatprep.mubr.f32.mxu0 %v688_v60  ;;  %v3227_v60 = vld [vmem:[#allocation16_spill] sm:$0xff] }
 0x183   :  { %2091 = vmatprep.subr.mxu1 %v2605_v29  ;;  %2049 = vmatpush3.msra.mxu0 %v2531_v50 }
 0x184   :  { %2092 = vmatpush3.msra.mxu1 %v2614_v32  ;;  %2050 = vmatprep.subr.mxu0 %v2534_v51 }
 0x185   :  { %2093 = vmatprep.subr.mxu1 %v2629_v62  ;;  %2051 = vmatpush3.msra.mxu0 %v2537_v52 }
 0x186   :  { %2094 = vmatpush3.msra.mxu1 %v2639_v5  ;;  %2052 = vmatprep.subr.mxu0 %v2546_v57 }
 0x187   :  { %2095 = vmatprep.subr.mxu1 %v2651_v11  ;;  %2053 = vmatpush3.msra.mxu0 %v2553_v61 }
 0x188   :  { %2096 = vmatpush3.msra.mxu1 %v2683_v0  ;;  %2054 = vmatprep.subr.mxu0 %v2603_v28 }
 0x189   :  { %2097 = vmatprep.subr.mxu1 %v2688_v12  ;;  %2055 = vmatpush3.msra.mxu0 %v2612_v31 }
 0x18a   :  { %2098 = vmatpush3.msra.mxu1 %v2690_v13  ;;  %2056 = vmatprep.subr.mxu0 %v2619_v39 }
 0x18b   :  { %2099 = vmatprep.subr.mxu1 %v2721_v18  ;;  %2057 = vmatpush3.msra.mxu0 %v2627_v45 }
 0x18c   :  { %2100 = vmatpush3.msra.mxu1 %v2723_v7  ;;  %2058 = vmatprep.subr.mxu0 %v2649_v10 }
 0x18d   :  { %2101 = vmatprep.subr.mxu1 %v2725_v8  ;;  %2059 = vmatpush3.msra.mxu0 %v2658_v15 }
 0x18e   :  { %2102 = vmatpush3.msra.mxu1 %v2731_v33  ;;  %2060 = vmatprep.subr.mxu0 %v2666_v19 }
 0x18f   :  { %2103 = vmatprep.subr.mxu1 %v3219_v56  ;;  %2061 = vmatpush3.msra.mxu0 %v3220_v3 }
 0x190   :  { %2104 = vmatpush3.msra.mxu1 %v3221_v59  ;;  %2062 = vmatprep.subr.mxu0 %v3222_v40 }
 0x191   :  { %2105 = vmatprep.subr.mxu1 %v2796_v14  ;;  %2063 = vmatpush3.msra.mxu0 %v3223_v44 }
 0x192   :  { %2106 = vmatpush3.msra.mxu1 %v2798_v17  ;;  %2064 = vmatprep.subr.mxu0 %v3224_v26 }
 0x193   :  { %2107 = vmatprep.subr.mxu1 %v2824_v58  ;;  %2065 = vmatpush3.msra.mxu0 %v3225_v9 }
 0x194   :  { %2108 = vmatpush3.msra.mxu1 %v2826_v27  ;;  %2066 = vmatprep.subr.mxu0 %v3226_v20 }
 0x195   :  { %2109 = vmatprep.subr.mxu1 %v2828_v22  ;;  %2067 = vmatpush3.msra.mxu0 %v3227_v60 }
 0x196   :  { %2110 = vmatpush3.msra.mxu1 %v2847_v63  ;;  %2068 = vmatprep.subr.mxu0 %v3228_v46 }
 0x197   :  { %2111 = vmatprep.subr.mxu1 %v2859_v21  ;;  %2069 = vmatpush3.msra.mxu0 %v3229_v24 }
 0x198   :  { %2112 = vmatpush3.msra.mxu1 %v2888_v34  ;;  %2070 = vmatprep.subr.mxu0 %v3230_v54 }
 0x199   :  { %1176 = vmatmul.mubr.f32.vlgmr.msra.gmra.mxu1 %v695_v38  ;;  %2151 = vmatprep.subr.mxu1 %v2491_v35  ;;  %v3233_v38 = vld [vmem:[#allocation23_spill] sm:$0xff]  ;;  %v3234_v35 = vld [vmem:[#allocation24_spill] sm:$0xff] }
 0x19a   :  { %2071 = vmatpush3.msra.mxu0 %v3231_v2  ;;  %2152 = vmatpush3.msra.mxu1 %v2493_v36  ;;  %v3235_v36 = vld [vmem:[#allocation25_spill] sm:$0xff] }
 0x19b   :  { %1446 = vmatprep.mubr.f32.mxu1 %v2915_v30  ;;  %2072 = vmatprep.subr.mxu0 %v3232_v6 }
 0x19c   :  { %2153 = vmatprep.subr.mxu1 %v2495_v37  ;;  %2073 = vmatpush3.msra.mxu0 %v2842_v1  ;;  %v3236_v37 = vld [vmem:[#allocation8_spill] sm:$0xff] }
 0x19d   :  { %2154 = vmatpush3.msra.mxu1 %v2506_v41  ;;  %2074 = vmatprep.subr.mxu0 %v2845_v16  ;;  %v3237_v41 = vand.u32 4294901760, %v3236_v37 }
 0x19e   :  { %2155 = vmatprep.subr.mxu1 %v2508_v42  ;;  %2075 = vmatpush3.msra.mxu0 %v3233_v38  ;;  %v3238_v42 = vand.u32 4294901760, %v2522_v47  ;;  %v3242_v47 = vand.u32 4294901760, %v2537_v52  ;;  %v3246_v52 = vand.u32 4294901760, %v2612_v31  ;;  %v3253_v31 = vand.u32 4294901760, %v3222_v40 }
 0x19f   :  { %2156 = vmatpush3.msra.mxu1 %v2510_v43  ;;  %2076 = vmatprep.subr.mxu0 %v3234_v35  ;;  %v3239_v43 = vand.u32 4294901760, %v2525_v48  ;;  %v3243_v48 = vand.u32 4294901760, %v2546_v57  ;;  %v3247_v57 = vand.u32 4294901760, %v2619_v39  ;;  %v3255_v39 = vand.u32 4294901760, %v3224_v26 }
 0x1a0   :  { %2157 = vmatprep.subr.mxu1 %v2527_v49  ;;  %2077 = vmatpush3.msra.mxu0 %v3235_v36  ;;  %v3240_v49 = vand.u32 4294901760, %v2531_v50  ;;  %v3244_v50 = vand.u32 4294901760, %v2553_v61  ;;  %v3248_v61 = vand.u32 4294901760, %v2627_v45  ;;  %v3256_v45 = vand.u32 4294901760, %v3225_v9 }
 0x1a1   :  { %2158 = vmatpush3.msra.mxu1 %v2539_v53  ;;  %1068 = vmatmul.mubr.f32.vlgmr.msra.gmra.mxu0 %v2918_v4  ;;  %v3241_v53 = vand.u32 4294901760, %v2534_v51  ;;  %v3245_v51 = vand.u32 4294901760, %v2603_v28  ;;  %v3251_v28 = vand.u32 4294901760, %v2666_v19  ;;  %v3263_v19 = vand.u32 4294901760, %v3232_v6 }
 0x1a2   :  { %2116 = vmatprep.subr.mxu0 %v3237_v41  ;;  %2159 = vmatprep.subr.mxu1 %v2592_v23  ;;  %v3249_v23 = vand.u32 4294901760, %v2649_v10  ;;  %v3259_v10 = vand.u32 4294901760, %v3228_v46 }
 0x1a3   :  { %2117 = vmatpush3.msra.mxu0 %v3238_v42  ;;  %1342 = vmatprep.mubr.f32.mxu0 %v2915_v30 }
 0x1a4   :  { %2160 = vmatpush3.msra.mxu1 %v2597_v25  ;;  %2118 = vmatprep.subr.mxu0 %v3239_v43  ;;  %v3250_v25 = vand.u32 4294901760, %v2658_v15  ;;  %v3261_v15 = vand.u32 4294901760, %v3230_v54 }
 0x1a5   :  { %2161 = vmatprep.subr.mxu1 %v2605_v29  ;;  %2119 = vmatpush3.msra.mxu0 %v3240_v49  ;;  %v3252_v29 = vand.u32 4294901760, %v3220_v3 }
 0x1a6   :  { %2162 = vmatpush3.msra.mxu1 %v2614_v32  ;;  %2120 = vmatprep.subr.mxu0 %v3241_v53  ;;  %v3254_v32 = vand.u32 4294901760, %v3223_v44 }
 0x1a7   :  { %2163 = vmatprep.subr.mxu1 %v2629_v62  ;;  %2121 = vmatpush3.msra.mxu0 %v3242_v47  ;;  %v3257_v62 = vand.u32 4294901760, %v3226_v20 }
 0x1a8   :  { %2164 = vmatpush3.msra.mxu1 %v2639_v5  ;;  %2122 = vmatprep.subr.mxu0 %v3243_v48  ;;  %v3258_v5 = vand.u32 4294901760, %v3227_v60 }
 0x1a9   :  { %2165 = vmatprep.subr.mxu1 %v2651_v11  ;;  %2123 = vmatpush3.msra.mxu0 %v3244_v50  ;;  %v3260_v11 = vand.u32 4294901760, %v3229_v24 }
 0x1aa   :  { %2166 = vmatpush3.msra.mxu1 %v2683_v0  ;;  %2124 = vmatprep.subr.mxu0 %v3245_v51  ;;  %v3264_v0 = vmov 0.0  }
 0x1ab   :  { %2167 = vmatprep.subr.mxu1 %v2688_v12  ;;  %2125 = vmatpush3.msra.mxu0 %v3246_v52  ;;  %v3265_v12 = vand.u32 4294901760, %v2842_v1 }
 0x1ac   :  { %2168 = vmatpush3.msra.mxu1 %v2690_v13  ;;  %2126 = vmatprep.subr.mxu0 %v3247_v57  ;;  %v3266_v13 = vand.u32 4294901760, %v2845_v16 }
 0x1ad   :  { %2169 = vmatprep.subr.mxu1 %v2721_v18  ;;  %2127 = vmatpush3.msra.mxu0 %v3248_v61  ;;  %v3262_v18 = vand.u32 4294901760, %v3231_v2 }
 0x1ae   :  { %2170 = vmatpush3.msra.mxu1 %v2723_v7  ;;  %2128 = vmatprep.subr.mxu0 %v3249_v23  ;;  %v3267_v7 = vand.u32 4294901760, %v3233_v38 }
 0x1af   :  { %2171 = vmatprep.subr.mxu1 %v2725_v8  ;;  %2129 = vmatpush3.msra.mxu0 %v3250_v25  ;;  %v3268_v8 = vand.u32 4294901760, %v3234_v35 }
 0x1b0   :  { %2172 = vmatpush3.msra.mxu1 %v2731_v33  ;;  %2130 = vmatprep.subr.mxu0 %v3251_v28  ;;  %v3269_v33 = vand.u32 4294901760, %v3235_v36  ;;  %v1466_v36 = vld [vmem:[%s3129_s5] sm:$0xff]  ;;  %s2358_s5 = smov [#allocation2]  }
 0x1b1   :  { %2173 = vmatprep.subr.mxu1 %v3219_v56  ;;  %2131 = vmatpush3.msra.mxu0 %v3252_v29  ;;  %v1501_v37 = vand.u32 4294901760, %v1466_v36  ;;  %s1923_s28 = sshll.u32 %s2358_s5, 4  ;;  %s1924_s28 = int_to_ptr.vmem [resolvable:$true] %s1923_s28 }
 0x1b2   :  { %2174 = vmatpush3.msra.mxu1 %v3221_v59  ;;  %2132 = vmatprep.subr.mxu0 %v3253_v31  ;;  %s2309_s29 = scalar_lea.vmem %s1924_s28, 128  ;;  %p2314_p1 = scmp.lt.s32.totalorder %s1924_s28, %s1924_s28 }
 0x1b3   :  { %2175 = vmatprep.subr.mxu1 %v2796_v14  ;;  %2133 = vmatpush3.msra.mxu0 %v3254_v32  ;;  %v1578_v41 = vsub.f32 %v1466_v36, %v1501_v37  ;;  %p2310_p0 = scmp.ne.s32.totalorder %s1924_s28, %s2309_s29  ;;  %p2315_p2 = scmp.lt.s32.totalorder %s2309_s29, %s2309_s29 }
 0x1b4   :  { %2176 = vmatpush3.msra.mxu1 %v2798_v17  ;;  %2134 = vmatprep.subr.mxu0 %v3255_v39 }
 0x1b5   :  { %2177 = vmatprep.subr.mxu1 %v2824_v58  ;;  %2135 = vmatpush3.msra.mxu0 %v3256_v45  ;;  %v1579_v42 = vand.u32 4294901760, %v1578_v41  ;;  %p2316_p3 = por %p2315_p2, %p2314_p1 }
 0x1b6   :  { %2178 = vmatpush3.msra.mxu1 %v2826_v27  ;;  %2136 = vmatprep.subr.mxu0 %v3257_v62 }
 0x1b7   :  { %2179 = vmatprep.subr.mxu1 %v2828_v22  ;;  %2137 = vmatpush3.msra.mxu0 %v3258_v5  ;;  %v1580_v43 = vsub.f32 %v1578_v41, %v1579_v42  ;;  %p2317_p4 = pnand %p2316_p3, %p2310_p0 }
 0x1b8   :  { %2180 = vmatpush3.msra.mxu1 %v2847_v63  ;;  %2138 = vmatprep.subr.mxu0 %v3259_v10 }
 0x1b9   :  { %2181 = vmatprep.subr.mxu1 %v2859_v21  ;;  %2139 = vmatpush3.msra.mxu0 %v3260_v11  ;;  %v1581_v49 = vand.u32 4294901760, %v1580_v43 }
 0x1ba   :  { %2182 = vmatpush3.msra.mxu1 %v2888_v34  ;;  %2140 = vmatprep.subr.mxu0 %v3261_v15 }
 0x1bb   :  { %1448 = vmatmul.mubr.f32.vlgmr.msra.gmra.mxu1 %v2913_v55  ;;  %2141 = vmatpush3.msra.mxu0 %v3262_v18 }
 0x1bc   :  { %2142 = vmatprep.subr.mxu0 %v3263_v19  ;;  %2269 = vmatprep.subr.mxu1 %v3264_v0 }
 0x1bd   :  { %2143 = vmatpush3.msra.mxu0 %v3265_v12  ;;  %2271 = vmatprep.mubr.msk.f32.mxu1 %vm2354_vm1, %v3264_v0 }
 0x1be   :  { %2144 = vmatprep.subr.mxu0 %v3266_v13  ;;  %2270 = vmatpush3.msra.mxu1 %v1581_v49 }
 0x1bf   :  { %2145 = vmatpush3.msra.mxu0 %v3267_v7  ;;  %2279 = vmatprep.subr.mxu1 %v3264_v0 }
 0x1c0   :  { %2146 = vmatprep.subr.mxu0 %v3268_v8 }
 0x1c1   :  { %2147 = vmatpush3.msra.mxu0 %v3269_v33 }
 0x1c2   :  { %1344 = vmatmul.mubr.f32.vlgmr.msra.gmra.mxu0 %v2913_v55  ;;  %2264 = vmatprep.subr.mxu0 %v3264_v0 }
 0x1c3   :  { %2266 = vmatprep.mubr.msk.f32.mxu0 %vm2354_vm1, %v3264_v0  ;;  %2265 = vmatpush3.msra.mxu0 %v1501_v37 }
 0x1c4   :  { %2274 = vmatprep.subr.mxu0 %v3264_v0 }
 0x238   :  { %v2043_v63 = vpop.f32.mrf.mxu1 }
 0x23a   :  { %v2044_v17 = vpop.f32.mrf.mxu1 }
 0x23b   :  { %v2045_v30 = vadd.f32 %v2044_v17, %v2043_v63 }
 0x240   :  { %v2008_v1 = vpop.f32.mrf.mxu0 }
 0x242   :  { %v2009_v16 = vpop.f32.mrf.mxu0 }
 0x243   :  { %v2010_v22 = vadd.f32 %v2009_v16, %v2008_v1 }
 0x245   :  { %v932_v4 = vadd.f32 %v2045_v30, %v2010_v22 }
 0x259   :  { %v2113_v58 = vpop.f32.mrf.mxu1 }
 0x25b   :  { %v2114_v34 = vpop.f32.mrf.mxu1 }
 0x25c   :  { %v2115_v59 = vadd.f32 %v2114_v34, %v2113_v58 }
 0x261   :  { %v2078_v14 = vpop.f32.mrf.mxu0 }
 0x263   :  { %v2079_v27 = vpop.f32.mrf.mxu0 }
 0x264   :  { %v2080_v21 = vadd.f32 %v2079_v27, %v2078_v14 }
 0x266   :  { %v1070_v3 = vadd.f32 %v2080_v21, %v932_v4 }
 0x268   :  { %v1178_v26 = vadd.f32 %v2115_v59, %v1070_v3 }
 0x27b   :  { %v2183_v56 = vpop.f32.mrf.mxu1 }
 0x27d   :  { %v2184_v40 = vpop.f32.mrf.mxu1 }
 0x27e   :  { %v2185_v20 = vadd.f32 %v2184_v40, %v2183_v56 }
 0x282   :  { %v2148_v55 = vpop.f32.mrf.mxu0 }
 0x284   :  { %v2149_v44 = vpop.f32.mrf.mxu0 }
 0x285   :  { %v2150_v9 = vadd.f32 %v2149_v44, %v2148_v55 }
 0x287   :  { %v1346_v60 = vadd.f32 %v2150_v9, %v1178_v26 }
 0x289   :  { %v1450_v46 = vadd.f32 %v2185_v20, %v1346_v60 }
 0x28b   :  { %v1454_v24 = vsel %vm1453_vm4, %v1450_v46, -inf }
 0x28c   :  { %1455 = vmax.xlane.f32.xlu1 %v1454_v24 }
 0x315   :  { %v1456_v54 = vpop.xlane.xlu1 %1455 }
 0x316   :  { %v1457_v2 = vsub.f32 %v1450_v46, %v1456_v54 }
 0x318   :  { %v1458_v6 = vmul.f32 1.442695, %v1457_v2 }
 0x31a   :  { %2305 = vpow2.f32 %v1458_v6 }
 0x327   :  { %v2306_v38 = vpop.eup %2305 }
 0x328   :  { %v1460_v35 = vsel %vm1453_vm4, %v2306_v38, 0.0 }
 0x329   :  { %1461 = vadd.xlane.f32.xlu0 %v1460_v35 }
 0x3b2   :  { %v1462_v53 = vpop.xlane.xlu0 %1461 }
 0x3b3   :  { %2307 = vrcp.f32 %v1462_v53 }
 0x3c0   :  { %v2308_v47 = vpop.eup %2307 }
 0x3c1   :  { %v1464_v48 = vmul.f32 %v2308_v47, %v2306_v38 }
 0x3c3   :  { %v1468_v50 = vsel %vm1453_vm4, %v1464_v48, 0  ;;  %1465 = vst.msk [vmem:[#allocation2] sm:$0xff] %vm1453_vm4, %v1464_v48 }
 0x3c4   :  { %v1536_v51 = vand.u32 4294901760, %v1468_v50 }
 0x3c6   :  { %v1537_v52 = vsub.f32 %v1468_v50, %v1536_v51  ;;  %2272 = vmatmul.mubr.f32.vlgmr.msra.gmra.mxu1 %v1536_v51 }
 0x3c7   :  { %2280 = vmatpush3.msra.mxu1 %v1501_v37  ;;  %2281 = vmatprep.mubr.msk.f32.mxu1 %vm2354_vm1, %v3264_v0 }
 0x3c8   :  { %v1538_v57 = vand.u32 4294901760, %v1537_v52  ;;  %2289 = vmatprep.subr.mxu1 %v3264_v0 }
 0x3ca   :  { %2282 = vmatmul.mubr.f32.vlgmr.msra.gmra.mxu1 %v1538_v57  ;;  %v1539_v61 = vsub.f32 %v1537_v52, %v1538_v57 }
 0x3cb   :  { %2290 = vmatpush3.msra.mxu1 %v1501_v37  ;;  %2291 = vmatprep.mubr.msk.f32.mxu1 %vm2354_vm1, %v3264_v0 }
 0x3cc   :  { %v1540_v23 = vand.u32 4294901760, %v1539_v61 }
 0x3ce   :  { %2267 = vmatmul.mubr.f32.vlgmr.msra.gmra.mxu0 %v1540_v23  ;;  %2292 = vmatmul.mubr.f32.vlgmr.msra.gmra.mxu1 %v1536_v51 }
 0x3cf   :  { %2275 = vmatpush3.msra.mxu0 %v1578_v41  ;;  %2276 = vmatprep.mubr.msk.f32.mxu0 %vm2354_vm1, %v3264_v0 }
 0x3d0   :  { %2284 = vmatprep.subr.mxu0 %v3264_v0 }
 0x3d2   :  { %2277 = vmatmul.mubr.f32.vlgmr.msra.gmra.mxu0 %v1537_v52 }
 0x3d3   :  { %2285 = vmatpush3.msra.mxu0 %v1579_v42  ;;  %2286 = vmatprep.mubr.msk.f32.mxu0 %vm2354_vm1, %v3264_v0 }
 0x3d6   :  { %2287 = vmatmul.mubr.f32.vlgmr.msra.gmra.mxu0 %v1536_v51 }
 0x3d7   :  { %2320 = shalt.err (!%p2317_p4)
}
 0x3d8   :  { %1926 = dma.vmem_to_hbm [thread:$0]  %s1924_s28, 128, %s3130_s6, [#allocation3]  }
 0x3d9   :  { %s2359_s9 = smov [#allocation4]  }
 0x3da   :  { %s1933_s2 = sshll.u32 %s2359_s9, 4  ;;  %s1934_s2 = int_to_ptr.vmem [resolvable:$true] %s1933_s2 }
 0x3db   :  { %s2329_s6 = scalar_lea.vmem %s1934_s2, 128  ;;  %p2334_p6 = scmp.lt.s32.totalorder %s1934_s2, %s1934_s2 }
 0x3dc   :  { %p2330_p5 = scmp.ne.s32.totalorder %s1934_s2, %s2329_s6  ;;  %p2335_p7 = scmp.lt.s32.totalorder %s2329_s6, %s2329_s6 }
 0x3de   :  { %p2336_p8 = por %p2335_p7, %p2334_p6 }
 0x3e0   :  { %p2337_p9 = pnand %p2336_p8, %p2330_p5 }
 0x486   :  { %v1618_v25 = vpop.f32.mrf.mxu1 }
 0x488   :  { %v2273_v28 = vpop.f32.mrf.mxu1 }
 0x48a   :  { %v1766_v29 = vpop.f32.mrf.mxu1 }
 0x48c   :  { %v2283_v31 = vpop.f32.mrf.mxu1 }
 0x48e   :  { %v1542_v32 = vpop.f32.mrf.mxu0  ;;  %v1912_v39 = vpop.f32.mrf.mxu1 }
 0x48f   :  { %v1619_v5 = vadd.f32 %v1618_v25, %v1542_v32 }
 0x490   :  { %v2268_v45 = vpop.f32.mrf.mxu0  ;;  %v2293_v62 = vpop.f32.mrf.mxu1 }
 0x492   :  { %v1692_v10 = vpop.f32.mrf.mxu0 }
 0x493   :  { %v1693_v11 = vadd.f32 %v1692_v10, %v1619_v5 }
 0x494   :  { %v2278_v15 = vpop.f32.mrf.mxu0 }
 0x495   :  { %v1767_v18 = vadd.f32 %v1766_v29, %v1693_v11 }
 0x496   :  { %v1840_v19 = vpop.f32.mrf.mxu0 }
 0x497   :  { %v1841_v0 = vadd.f32 %v1840_v19, %v1767_v18 }
 0x498   :  { %v2288_v12 = vpop.f32.mrf.mxu0 }
 0x499   :  { %v1913_v13 = vadd.f32 %v1912_v39, %v1841_v0 }
 0x49b   :  { %1916 = vst.msk [vmem:[#allocation4] sm:$0xff] %vm39_vm0, %v1913_v13 }
 0x49c   :  { %2340 = shalt.err (!%p2337_p9)
}
 0x49d   :  { %1936 = dma.vmem_to_hbm [thread:$0]  %s1934_s2, 128, %s3131_s7, [#allocation5]  }
 0x49e   :  { %2349 = dma.done.wait [#allocation3], 128  }
 0x49f   :  { %2350 = vsyncadd [#allocation3], 4294967168 }
 0x4a0   :  { %2351 = dma.done.wait [#allocation5], 128  }
 0x4a1   :  { %2352 = vsyncadd [#allocation5], 4294967168 }
 0x4a2   :  { %1943 = vsyncpa [#allocation3], 1 }
 0x4a3   :  { %1944 = vsyncpa [#allocation5], 1 }

</bundles_post_ra>
